<compile_context>
chip_gen: v6e
topology: v6e:2x2x1
jax: 0.10.0
libtpu: 0.0.40
codegen_flags: <defaults>
</compile_context>

<pallas_src>
import functools

import numpy as np
import jax
import jax.numpy as jnp
from jax.experimental import pallas as pl
from jax.experimental.pallas import tpu as pltpu


def _hann_window(win_length):
    # torch.hann_window(win_length), periodic=True (the torch default)
    n = np.arange(win_length, dtype=np.float64)
    return 0.5 * (1.0 - np.cos(2.0 * np.pi * n / win_length))


def _build_istft_constants(n_fft, hop, win_length, n_frames, out_row0, q_out):
    """Fused iRFFT+window synthesis matrix W (2F, N) and the inverse
    squared-window envelope for the output region, shaped (q_out, hop)."""
    F = n_fft // 2 + 1
    N = n_fft
    T = n_frames

    w = _hann_window(win_length)
    left = (N - win_length) // 2              # torch centres window inside n_fft
    w_pad = np.zeros(N, dtype=np.float64)
    w_pad[left:left + win_length] = w

    k = np.arange(F, dtype=np.float64)[:, None]
    n = np.arange(N, dtype=np.float64)[None, :]
    ang = 2.0 * np.pi * k * n / N
    coef = np.full((F, 1), 2.0)
    coef[0, 0] = 1.0
    if N % 2 == 0:
        coef[-1, 0] = 1.0
    C = (coef * np.cos(ang) / N) * w_pad[None, :]      # (F, N)
    S = (coef * np.sin(ang) / N) * w_pad[None, :]      # (F, N)
    # frames = [xre; xim]^T @ W  (single MXU matmul, window folded in)
    W = np.concatenate([C, -S], axis=0)                # (2F, N)

    L = N + hop * (T - 1)
    env = np.zeros(L, dtype=np.float64)
    for t in range(T):
        env[t * hop:t * hop + N] += w_pad ** 2
    safe = np.where(env > 1e-11, env, 1.0)
    env_inv = np.where(env > 1e-11, 1.0 / safe, 0.0)
    env_inv = env_inv[out_row0 * hop:out_row0 * hop + q_out * hop]
    env_inv = env_inv.reshape(q_out, hop)

    return jnp.asarray(W, jnp.float32), jnp.asarray(env_inv, jnp.float32)


def _istft_kernel(x_ref, w_ref, envinv_ref, out_ref, acc_ref, local_ref,
                  *, R, hop, TT, out_row0, Q_out, num_tc):
    # x_ref      : (1, TT, 2F)        one frame-tile of [re; im] spectra
    # w_ref      : (2F, N)            fused iRFFT+window synthesis matrix
    # envinv_ref : (Q_out, hop)       1 / sum_t window^2 over the output region
    # out_ref    : (1, Q_out, hop)    trimmed waveform, rows of `hop` samples
    # acc_ref    : (Q_pad, hop) VMEM  overlap-add accumulator (resident over c)
    # local_ref  : (TT+R-1, hop) VMEM per-tile fold buffer
    c = pl.program_id(1)

    # fused inverse-rFFT of every frame + hann window: ONE MXU matmul
    frames = jnp.dot(x_ref[0], w_ref[...],
                     preferred_element_type=jnp.float32)        # (TT, N)

    if num_tc == 1:
        # whole utterance in a single step: fold straight into the accumulator
        # with static offsets, normalize, trim and store.
        acc_ref[...] = jnp.zeros_like(acc_ref)
        for r in range(R):                                       # R = N // hop
            acc_ref[r:r + TT, :] += frames[:, r * hop:(r + 1) * hop]
        out_ref[0] = (acc_ref[out_row0:out_row0 + Q_out, :]
                      * envinv_ref[...]).astype(out_ref.dtype)
    else:
        @pl.when(c == 0)
        def _init():
            acc_ref[...] = jnp.zeros_like(acc_ref)

        # local overlap-add fold (VPU adds, no matmuls-by-zero)
        local_ref[...] = jnp.zeros_like(local_ref)
        for r in range(R):
            local_ref[r:r + TT, :] += frames[:, r * hop:(r + 1) * hop]

        # accumulate this tile's contribution at its (TT-aligned) row offset
        row0 = pl.multiple_of(c * TT, TT)
        acc_ref[pl.ds(row0, TT + R - 1), :] += local_ref[...]

        @pl.when(c == pl.num_programs(1) - 1)
        def _finalize():
            out_ref[0] = (acc_ref[out_row0:out_row0 + Q_out, :]
                          * envinv_ref[...]).astype(out_ref.dtype)


def decoder_stft_pallas(x, noisy_phase=None, *, n_fft, hop_length, win_length,
                        length=None):
    """JAX/Pallas equivalent of Decoder_STFT.forward.

    x           : (B, F, T) real part (or complex array if noisy_phase is None)
    noisy_phase : (B, F, T) imaginary part (module does x + 1j*noisy_phase)
    """
    if noisy_phase is None:
        xre = jnp.real(x).astype(jnp.float32)
        xim = jnp.imag(x).astype(jnp.float32)
    else:
        xre = x.astype(jnp.float32)
        xim = noisy_phase.astype(jnp.float32)

    B, F, T = xre.shape
    N = n_fft
    hop = hop_length
    assert F == N // 2 + 1
    # TODO(synk): hop_length not dividing n_fft would need a per-frame
    # dynamic-offset fold; not implemented (rare in practice).
    assert N % hop == 0, "decoder_stft_pallas requires n_fft % hop_length == 0"
    R = N // hop
    half = N // 2
    Q = T - 1 + R                      # untrimmed output rows of `hop` samples

    if half % hop == 0:                # centre trim is a whole number of rows
        out_row0 = half // hop         #   -> trim fully inside the kernel
        Q_out = Q - 2 * out_row0
        rem_trim = 0
    else:                              # odd case: emit full, trim in wrapper
        out_row0 = 0
        Q_out = Q
        rem_trim = half

    W, env_inv = _build_istft_constants(N, hop, win_length, T, out_row0, Q_out)

    # frame-tile size: single block for short signals, 256-frame tiles
    # (lane-aligned) for long ones so VMEM stays bounded on v7x/v5e.
    if T > 256:
        TT = 256
        T_pad = ((T + TT - 1) // TT) * TT
    else:
        TT = T
        T_pad = T
    num_tc = T_pad // TT
    Q_pad = T_pad - 1 + R

    # One fused layout pass: [re; im] concat + time-major transpose (+ zero
    # frame padding when tiling).  Replaces the two separate full transposes.
    X = jnp.concatenate([xre, xim], axis=1)            # (B, 2F, T)
    X = jnp.transpose(X, (0, 2, 1))                    # (B, T, 2F)
    if T_pad != T:
        X = jnp.pad(X, ((0, 0), (0, T_pad - T), (0, 0)))

    kernel = functools.partial(_istft_kernel, R=R, hop=hop, TT=TT,
                               out_row0=out_row0, Q_out=Q_out, num_tc=num_tc)

    flops = 2 * B * T_pad * (2 * F) * N + B * T_pad * N
    bytes_accessed = 4 * (int(X.size) + int(W.size) + int(env_inv.size)
                          + B * Q_out * hop)

    out = pl.pallas_call(
        kernel,
        out_shape=jax.ShapeDtypeStruct((B, Q_out, hop), jnp.float32),
        grid_spec=pltpu.PrefetchScalarGridSpec(
            num_scalar_prefetch=0,
            grid=(B, num_tc),
            in_specs=[
                pl.BlockSpec((1, TT, 2 * F), lambda b, c: (b, c, 0)),
                pl.BlockSpec((2 * F, N), lambda b, c: (0, 0)),
                pl.BlockSpec((Q_out, hop), lambda b, c: (0, 0)),
            ],
            out_specs=pl.BlockSpec((1, Q_out, hop), lambda b, c: (b, 0, 0)),
            scratch_shapes=[
                pltpu.VMEM((Q_pad, hop), jnp.float32),
                pltpu.VMEM((TT + R - 1, hop), jnp.float32),
            ],
        ),
        compiler_params=pltpu.CompilerParams(
            dimension_semantics=("parallel", "arbitrary"),
            vmem_limit_bytes=48 * 1024 * 1024,
        ),
        cost_estimate=pl.CostEstimate(
            flops=flops, transcendentals=0, bytes_accessed=bytes_accessed),
    )(X, W, env_inv)

    y = out.reshape(B, Q_out * hop)                    # free row-major reshape
    if rem_trim:
        y = y[:, rem_trim:Q_out * hop - rem_trim]
    if length is not None:
        cur = y.shape[1]
        if length > cur:
            y = jnp.pad(y, ((0, 0), (0, length - cur)))
        else:
            y = y[:, :length]
    # TODO(synk): torch.istft's runtime NOLA (nonzero-overlap) assertion is not
    # reproduced; near-zero-envelope samples are zeroed instead of raising.
    return y


def _istft_ref_np(xre, xim, n_fft, hop_length, win_length, length=None):
    """Pure numpy reference mirroring torch.istft(center=True, hann window)."""
    B, F, T = xre.shape
    w = _hann_window(win_length)
    left = (n_fft - win_length) // 2
    w_pad = np.zeros(n_fft)
    w_pad[left:left + win_length] = w

    spec = xre.astype(np.float64) + 1j * xim.astype(np.float64)   # (B, F, T)
    frames = np.fft.irfft(spec, n=n_fft, axis=1)                  # (B, N, T)
    frames = frames * w_pad[None, :, None]

    L = n_fft + hop_length * (T - 1)
    y = np.zeros((B, L))
    env = np.zeros(L)
    for t in range(T):
        y[:, t * hop_length:t * hop_length + n_fft] += frames[:, :, t]
        env[t * hop_length:t * hop_length + n_fft] += w_pad ** 2

    half = n_fft // 2
    y = y[:, half:L - half]
    env = env[half:L - half]
    y = y / np.where(env > 1e-11, env, 1.0)
    if length is not None:
        if length > y.shape[1]:
            y = np.pad(y, ((0, 0), (0, length - y.shape[1])))
        else:
            y = y[:, :length]
    return y


if __name__ == "__main__":
    n_fft, hop_length, win_length = 16, 4, 16
    B, T = 2, 8
    F = n_fft // 2 + 1

    key = jax.random.PRNGKey(0)
    k1, k2 = jax.random.split(key)
    x = jax.random.normal(k1, (B, F, T), dtype=jnp.float32)            # real
    noisy_phase = jax.random.normal(k2, (B, F, T), dtype=jnp.float32)  # imag

    y = decoder_stft_pallas(x, noisy_phase, n_fft=n_fft,
                            hop_length=hop_length, win_length=win_length)
    y = jax.block_until_ready(y)

    y_ref = _istft_ref_np(np.asarray(x), np.asarray(noisy_phase),
                          n_fft, hop_length, win_length)
    assert y.shape == y_ref.shape, (y.shape, y_ref.shape)
    np.testing.assert_allclose(np.asarray(y), y_ref, rtol=1e-4, atol=1e-4)
    print("KERNEL_OK")
</pallas_src>

<mosaic_0001>
module attributes {stable_mosaic.version = 11 : i64} {
  func.func @_istft_kernel(%arg0: i32, %arg1: i32, %arg2: memref<1x8x18xf32, #tpu.memory_space<vmem>>, %arg3: memref<18x16xf32, #tpu.memory_space<vmem>>, %arg4: memref<7x4xf32, #tpu.memory_space<vmem>>, %arg5: memref<1x7x4xf32, #tpu.memory_space<vmem>>, %arg6: memref<11x4xf32, #tpu.memory_space<vmem>>, %arg7: memref<11x4xf32, #tpu.memory_space<vmem>>) attributes {dimension_semantics = [#tpu.dimension_semantics<parallel>, #tpu.dimension_semantics<arbitrary>], iteration_bounds = array<i64: 2, 1>, scalar_prefetch = 0 : i64, scratch_operands = 2 : i64, tpu.core_type = #tpu.core_type<tc>, window_params = [{transform_indices = @transform_0, window_bounds = array<i64: 1, 8, 18>}, {pipeline_mode = #tpu.pipeline_mode<synchronous>, transform_indices = @transform_1, window_bounds = array<i64: 18, 16>}, {pipeline_mode = #tpu.pipeline_mode<synchronous>, transform_indices = @transform_2, window_bounds = array<i64: 7, 4>}, {transform_indices = @transform_3, window_bounds = array<i64: 1, 7, 4>}]} {
    %c0 = arith.constant 0 : index
    %c0_0 = arith.constant 0 : index
    %c0_1 = arith.constant 0 : index
    %0 = vector.load %arg2[%c0, %c0_0, %c0_1] : memref<1x8x18xf32, #tpu.memory_space<vmem>>, vector<1x8x18xf32>
    %1 = vector.shape_cast %0 : vector<1x8x18xf32> to vector<8x18xf32>
    %c0_2 = arith.constant 0 : index
    %c0_3 = arith.constant 0 : index
    %2 = vector.load %arg3[%c0_2, %c0_3] : memref<18x16xf32, #tpu.memory_space<vmem>>, vector<18x16xf32>
    %cst = arith.constant dense<0.000000e+00> : vector<8x16xf32>
    %3 = tpu.matmul %1, %2, %cst {dimension_numbers = #tpu.dot_dimension_numbers<[1], [0], [0], [1], [0, 0, 1, 1], [], []>} : vector<8x18xf32>, vector<18x16xf32>, vector<8x16xf32> -> vector<8x16xf32>
    %cst_4 = arith.constant 0.000000e+00 : f32
    %4 = vector.broadcast %cst_4 : f32 to vector<11x4xf32>
    %c0_5 = arith.constant 0 : index
    %c0_6 = arith.constant 0 : index
    %5 = vector.load %arg6[%c0_5, %c0_6] : memref<11x4xf32, #tpu.memory_space<vmem>>, vector<11x4xf32>
    tpu.vector_store %arg6[%c0_5, %c0_6], %4 {strides = array<i32>} : memref<11x4xf32, #tpu.memory_space<vmem>>, vector<11x4xf32>,
    %c0_7 = arith.constant 0 : index
    %c0_8 = arith.constant 0 : index
    %6 = vector.load %arg6[%c0_7, %c0_8] : memref<11x4xf32, #tpu.memory_space<vmem>>, vector<8x4xf32>
    %7 = vector.extract_strided_slice %3 {offsets = [0, 0], sizes = [8, 4], strides = [1, 1]} : vector<8x16xf32> to vector<8x4xf32>
    %8 = arith.addf %6, %7 : vector<8x4xf32>
    %c0_9 = arith.constant 0 : index
    %c0_10 = arith.constant 0 : index
    %9 = vector.load %arg6[%c0_9, %c0_10] : memref<11x4xf32, #tpu.memory_space<vmem>>, vector<8x4xf32>
    tpu.vector_store %arg6[%c0_9, %c0_10], %8 {strides = array<i32>} : memref<11x4xf32, #tpu.memory_space<vmem>>, vector<8x4xf32>,
    %c1 = arith.constant 1 : index
    %c0_11 = arith.constant 0 : index
    %10 = vector.load %arg6[%c1, %c0_11] : memref<11x4xf32, #tpu.memory_space<vmem>>, vector<8x4xf32>
    %11 = vector.extract_strided_slice %3 {offsets = [0, 4], sizes = [8, 4], strides = [1, 1]} : vector<8x16xf32> to vector<8x4xf32>
    %12 = arith.addf %10, %11 : vector<8x4xf32>
    %c1_12 = arith.constant 1 : index
    %c0_13 = arith.constant 0 : index
    %13 = vector.load %arg6[%c1_12, %c0_13] : memref<11x4xf32, #tpu.memory_space<vmem>>, vector<8x4xf32>
    tpu.vector_store %arg6[%c1_12, %c0_13], %12 {strides = array<i32>} : memref<11x4xf32, #tpu.memory_space<vmem>>, vector<8x4xf32>,
    %c2 = arith.constant 2 : index
    %c0_14 = arith.constant 0 : index
    %14 = vector.load %arg6[%c2, %c0_14] : memref<11x4xf32, #tpu.memory_space<vmem>>, vector<8x4xf32>
    %15 = vector.extract_strided_slice %3 {offsets = [0, 8], sizes = [8, 4], strides = [1, 1]} : vector<8x16xf32> to vector<8x4xf32>
    %16 = arith.addf %14, %15 : vector<8x4xf32>
    %c2_15 = arith.constant 2 : index
    %c0_16 = arith.constant 0 : index
    %17 = vector.load %arg6[%c2_15, %c0_16] : memref<11x4xf32, #tpu.memory_space<vmem>>, vector<8x4xf32>
    tpu.vector_store %arg6[%c2_15, %c0_16], %16 {strides = array<i32>} : memref<11x4xf32, #tpu.memory_space<vmem>>, vector<8x4xf32>,
    %c3 = arith.constant 3 : index
    %c0_17 = arith.constant 0 : index
    %18 = vector.load %arg6[%c3, %c0_17] : memref<11x4xf32, #tpu.memory_space<vmem>>, vector<8x4xf32>
    %19 = vector.extract_strided_slice %3 {offsets = [0, 12], sizes = [8, 4], strides = [1, 1]} : vector<8x16xf32> to vector<8x4xf32>
    %20 = arith.addf %18, %19 : vector<8x4xf32>
    %c3_18 = arith.constant 3 : index
    %c0_19 = arith.constant 0 : index
    %21 = vector.load %arg6[%c3_18, %c0_19] : memref<11x4xf32, #tpu.memory_space<vmem>>, vector<8x4xf32>
    tpu.vector_store %arg6[%c3_18, %c0_19], %20 {strides = array<i32>} : memref<11x4xf32, #tpu.memory_space<vmem>>, vector<8x4xf32>,
    %c2_20 = arith.constant 2 : index
    %c0_21 = arith.constant 0 : index
    %22 = vector.load %arg6[%c2_20, %c0_21] : memref<11x4xf32, #tpu.memory_space<vmem>>, vector<7x4xf32>
    %c0_22 = arith.constant 0 : index
    %c0_23 = arith.constant 0 : index
    %23 = vector.load %arg4[%c0_22, %c0_23] : memref<7x4xf32, #tpu.memory_space<vmem>>, vector<7x4xf32>
    %24 = arith.mulf %22, %23 : vector<7x4xf32>
    %c0_24 = arith.constant 0 : index
    %c0_25 = arith.constant 0 : index
    %c0_26 = arith.constant 0 : index
    %25 = vector.load %arg5[%c0_24, %c0_25, %c0_26] : memref<1x7x4xf32, #tpu.memory_space<vmem>>, vector<1x7x4xf32>
    %26 = vector.shape_cast %25 : vector<1x7x4xf32> to vector<7x4xf32>
    %27 = vector.shape_cast %24 : vector<7x4xf32> to vector<1x7x4xf32>
    tpu.vector_store %arg5[%c0_24, %c0_25, %c0_26], %27 {strides = array<i32>} : memref<1x7x4xf32, #tpu.memory_space<vmem>>, vector<1x7x4xf32>,
    return
  }
  func.func @transform_0(%arg0: i32, %arg1: i32) -> (i32, i32, i32) {
    %c0_i32 = arith.constant 0 : i32
    %c0_i32_0 = arith.constant 0 : i32
    return %arg0, %arg1, %c0_i32 : i32, i32, i32
  }
  func.func @transform_1(%arg0: i32, %arg1: i32) -> (i32, i32) {
    %c0_i32 = arith.constant 0 : i32
    %c0_i32_0 = arith.constant 0 : i32
    %c0_i32_1 = arith.constant 0 : i32
    return %c0_i32, %c0_i32_0 : i32, i32
  }
  func.func @transform_2(%arg0: i32, %arg1: i32) -> (i32, i32) {
    %c0_i32 = arith.constant 0 : i32
    %c0_i32_0 = arith.constant 0 : i32
    %c0_i32_1 = arith.constant 0 : i32
    return %c0_i32, %c0_i32_0 : i32, i32
  }
  func.func @transform_3(%arg0: i32, %arg1: i32) -> (i32, i32, i32) {
    %c0_i32 = arith.constant 0 : i32
    %c0_i32_0 = arith.constant 0 : i32
    %c0_i32_1 = arith.constant 0 : i32
    return %arg0, %c0_i32, %c0_i32_0 : i32, i32, i32
  }
}

</mosaic_0001>

<bundles_post_ra>
// kernel: tpu_custom_call.1
= control target key start
LH: loop header
LB: loop body
LE: loop exit
PB: predicated region body
PF: predicated region fallthrough
CT: control target
= control target key end

     0   :  { %s468_s12 = smov 0   ;;  %s470_s13 = smov 0   ;;  %s525_s0 = inlined_call_operand.vmem [shape: f32[2,8,18], index: 0, kind: input, shape index: {}]   ;;  %s526_s1 = inlined_call_operand.vmem [shape: f32[18,16], index: 1, kind: input, shape index: {}]   ;;  %s527_s2 = inlined_call_operand.vmem [shape: f32[7,4], index: 2, kind: input, shape index: {}]   ;;  %s528_s3 = inlined_call_operand.vmem [shape: f32[2,7,4], index: 3, kind: output, shape index: {}]  }
   0x1   :  { %s472_s14 = smov 0  }
   0x2 LB: > { %s25_s15 = sadd.s32 1, %s437_s13  ;;  %p370_p0 = scmp.ge.s32.totalorder %s441_s14, 1  ;;  %s441_s14 = sphi %s472_s14, %s13_s14   ;;  %s437_s13 = sphi %s470_s13, %s530_s13   ;;  %s433_s12 = sphi %s468_s12, %s529_s12  }
   0x3   : > { %p27_p1 = scmp.ge.s32.totalorder %s25_s15, 2  ;;  %p153_p2 = scmp.lt.s32.totalorder %s441_s14, 3 }
   0x5   : > { %s532_s15 = smov (%p27_p1, %s25_s15), 0  ;;  %p154_p3 = pnand %p370_p0, %p153_p2 }
   0x6   : > { %p178_p4 = scmp.lt.s32.totalorder (!%p154_p3), %s433_s12, 1  ;;  %s445_s26 = smov (!%p154_p3), 116  }
   0x7   : > { %157 = sbr.rel (%p154_p3) target bundleno = 360 (0x168), region = 32  ;;  %s446_s27 = smov (!%p154_p3), 124  }
   0x8   : > { %s447_s28 = smov (!%p154_p3), 120  }
   0xc   : > { %v192_v0 = vld [vmem:[%s526_s1 + $0x10] sm:$0x3]  ;;  %vm197_vm0 = vcmask 1041408   ;;  %v443_v1 = vmov 0.0   ;;  %v191_v2 = vld [vmem:[%s526_s1 + $0x8] sm:$0xff]  ;;  %vm444_vm1 = vmmov 0  }
   0xd   : > { %381 = vmatprep.subr.mxu0 %v443_v1  ;;  %387 = vmatprep.mubr.msk.f32.mxu0 %vm444_vm1, %v443_v1  ;;  %v190_v3 = vld [vmem:[%s526_s1] sm:$0xff]  ;;  %s534_s12 = smov (!%p178_p4, %s433_s12), 1  ;;  %vm193_vm2 = vcmask 146432   ;;  %vm271_vm3 = vcmask 31744   ;;  %vm273_vm4 = vcmask 26624   ;;  %vm300_vm5 = vcmask 30720  }
   0xe   : > { %382 = vmatpush3.msk.msra.mxu0 %vm197_vm0, %v192_v0  ;;  %s371_s22 = sshll.u32 %s534_s12, 3  ;;  %272 = vst.msk [vmem:[#allocation2] sm:$0xff] %vm271_vm3, %v443_v1  ;;  %v298_v18 = vld [vmem:[%s527_s2] sm:$0x7f] }
   0xf   : > { %383 = vmatprep.subr.mxu0 %v443_v1  ;;  %s184_s25 = scalar_lea.vmem %s525_s0, %s371_s22  ;;  %274 = vst.msk [vmem:[#allocation2 + $0x8] sm:$0x7] %vm273_vm4, %v443_v1  ;;  %s188_s6 = scalar_lea.vmem %s528_s3, %s371_s22 }
  0x10   : > { %384 = vmatpush3.msra.mxu0 %v191_v2  ;;  %v189_v4 = vld [vmem:[%s184_s25] sm:$0xff] }
  0x11   : > { %385 = vmatprep.subr.mxu0 %v443_v1 }
  0x12   : > { %386 = vmatpush3.msra.mxu0 %v190_v3 }
  0x13   : > { %388 = vmatmul.mubr.msk.f32.vlgmr.msra.gmra.mxu0 %vm193_vm2, %v189_v4 }
  0x15   : > { %v275_v5 = vld [vmem:[#allocation2] sm:$0xff] }
  0xd3   : > { %v267_v6 = vpop.f32.mrf.mxu0 }
  0xd4   : > { %v276_v7 = vadd.f32 %v275_v5, %v267_v6  ;;  %292 = vrot.lane.b32.xlu1 %v267_v6, %s445_s26  ;;  %280 = vrot.lane.b32.xlu0 %v267_v6, %s446_s27 }
  0xd5   : > { %v389_v8 = vpop.f32.mrf.mxu0 }
  0xd6   : > { %277 = vst.msk [vmem:[#allocation2] sm:$0xff] %vm271_vm3, %v276_v7 }
  0xd8   : > { %286 = vrot.lane.b32.xlu0 %v267_v6, %s447_s28 }
  0xdd   : > { %v278_v10 = vld [vmem:[#allocation2 + $0x1] sm:$0xff] }
 0x146   : > { %v281_v9 = vpop.permute.xlu0 %280  ;;  %v293_v15 = vpop.permute.xlu1 %292 }
 0x147   : > { %v283_v11 = vadd.f32 %v281_v9, %v278_v10 }
 0x149   : > { %284 = vst.msk [vmem:[#allocation2 + $0x1] sm:$0xff] %vm271_vm3, %v283_v11 }
 0x14a   : > { %v287_v12 = vpop.permute.xlu0 %286 }
 0x150   : > { %v285_v13 = vld [vmem:[#allocation2 + $0x2] sm:$0xff] }
 0x151   : > { %v289_v14 = vadd.f32 %v287_v12, %v285_v13 }
 0x153   : > { %290 = vst.msk [vmem:[#allocation2 + $0x2] sm:$0xff] %vm271_vm3, %v289_v14 }
 0x15a   : > { %v291_v16 = vld [vmem:[#allocation2 + $0x3] sm:$0xff] }
 0x15b   : > { %v295_v17 = vadd.f32 %v293_v15, %v291_v16 }
 0x15d   : > { %296 = vst.msk [vmem:[#allocation2 + $0x3] sm:$0xff] %vm271_vm3, %v295_v17 }
 0x164   : > { %v297_v19 = vld [vmem:[#allocation2 + $0x2] sm:$0x7f] }
 0x165   : > { %v299_v20 = vmul.f32 %v298_v18, %v297_v19 }
 0x167   : > { %301 = vst.msk [vmem:[%s188_s6] sm:$0x7f] %vm300_vm5, %v299_v20 }
 0x168 PF: > { %s13_s14 = sadd.s32 1, %s441_s14   ;;  %s529_s12 = smov %s437_s13 }
 0x169   : > { %p10_p5 = scmp.ge.s32.totalorder %s13_s14, 4   ;;  %s530_s13 = smov %s532_s15 }
 0x16b   :  { %12 = sbr.rel (!%p10_p5) target bundleno = 2 (0x2), region = 62 }

</bundles_post_ra>
